<compile_context>
chip_gen: v5e
topology: v5e:2x2
jax: 0.10.0
libtpu: 0.0.40
codegen_flags: <defaults>
</compile_context>

<pallas_src>
import functools
import math

import jax
import jax.numpy as jnp
from jax import lax
from jax.experimental import pallas as pl
from jax.experimental.pallas import tpu as pltpu


def _attention_kernel(xf_ref, xq_ref, wq_ref, wkv_ref, wo_ref,
                      cosf_ref, sinf_ref, cosq_ref, sinq_ref,
                      o_ref, k_sc, v_sc,
                      *, n_heads, head_dim, q_tile, scale):
    """Grid = (B, num_q_tiles).  qt == 0 projects + RoPEs K/V for the whole
    sequence into VMEM scratch; every step computes attention for its q tile
    and writes the fully projected [TQ, E] output tile."""
    qt = pl.program_id(1)
    S = xf_ref.shape[1]
    E = xf_ref.shape[2]
    HD = head_dim
    half = HD // 2
    TQ = q_tile

    def rope(t, c, s):
        # rotate-half on the de-interleaved head dim: rot = [-t2, t1]
        t1 = t[:, :half]
        t2 = t[:, half:]
        rot = jnp.concatenate([-t2, t1], axis=1)
        return t * c + rot * s

    # ---- K / V projection (+ RoPE on K) once per batch, cached in VMEM ----
    @pl.when(qt == 0)
    def _():
        x_all = xf_ref[0]                                      # [S, E] bf16
        kv = jnp.dot(x_all, wkv_ref[...],
                     preferred_element_type=jnp.float32)       # [S, 2E] f32
        cf = cosf_ref[...]                                     # [S, HD]
        sf = sinf_ref[...]
        k_heads = [rope(kv[:, h * HD:(h + 1) * HD], cf, sf)
                   for h in range(n_heads)]
        k_sc[...] = jnp.concatenate(k_heads, axis=1).astype(k_sc.dtype)
        v_sc[...] = kv[:, E:].astype(v_sc.dtype)

    # ---- Q projection for this q tile (all heads in one wide matmul) ----
    q_all = jnp.dot(xq_ref[0], wq_ref[...],
                    preferred_element_type=jnp.float32)        # [TQ, E] f32
    cq = cosq_ref[...]                                         # [TQ, HD]
    sq = sinq_ref[...]

    # Causal mask for this q tile against all S key positions.
    rows = qt * TQ + lax.broadcasted_iota(jnp.int32, (TQ, S), 0)
    cols = lax.broadcasted_iota(jnp.int32, (TQ, S), 1)
    visible = cols <= rows

    k_all = k_sc[...]                                          # [S, E] bf16
    v_all = v_sc[...]                                          # [S, E] bf16

    head_out = []
    for h in range(n_heads):                                   # static unroll
        qh = rope(q_all[:, h * HD:(h + 1) * HD], cq, sq).astype(jnp.bfloat16)
        kh = k_all[:, h * HD:(h + 1) * HD]
        vh = v_all[:, h * HD:(h + 1) * HD]
        # scores: q @ k.T (contraction over head dim), f32 accumulate
        s = lax.dot_general(qh, kh, (((1,), (1,)), ((), ())),
                            preferred_element_type=jnp.float32) * scale
        s = jnp.where(visible, s, -jnp.inf)
        s = s - jnp.max(s, axis=-1, keepdims=True)
        p = jnp.exp(s)
        p = p * pl.reciprocal(jnp.sum(p, axis=-1, keepdims=True), approx=True)
        head_out.append(jnp.dot(p.astype(jnp.bfloat16), vh,
                                preferred_element_type=jnp.float32))

    # Single wide output projection over the head-concatenated buffer.
    attn = jnp.concatenate(head_out, axis=1).astype(jnp.bfloat16)   # [TQ, E]
    o_ref[0] = jnp.dot(attn, wo_ref[...],
                       preferred_element_type=jnp.float32).astype(o_ref.dtype)


def attention_forward(x, Wq, Wk, Wv, Wo, n_heads, q_tile=None):
    """x: [B, S, E] f32.  W*: torch nn.Linear weights [E, E] (y = x @ W.T)."""
    B, S, E = x.shape
    H = n_heads
    HD = E // H
    scale = 1.0 / math.sqrt(E)          # matches reference: 1/sqrt(d_embed)

    if q_tile is None:
        q_tile = S if S <= 512 else 512
    TQ = q_tile
    assert S % TQ == 0, "q_tile must divide S"
    QT = S // TQ

    # De-interleaving permutation of the head dim: even indices first, odd second.
    perm = jnp.concatenate([jnp.arange(0, HD, 2), jnp.arange(1, HD, 2)])

    def deinterleave_cols(WT):          # [E, E], columns grouped per head
        return WT.reshape(E, H, HD)[:, :, perm].reshape(E, E)

    wq = deinterleave_cols(Wq.T).astype(jnp.bfloat16)                  # [E, E]
    wkv = jnp.concatenate([deinterleave_cols(Wk.T), Wv.T],
                          axis=1).astype(jnp.bfloat16)                 # [E, 2E]
    wo = Wo.T.astype(jnp.bfloat16)                                     # [E, E]

    # RoPE tables in rotate-half layout: cos = [c, c], sin = [s, s].
    theta = 1.0 / (10000.0 ** (jnp.arange(0, HD, 2, dtype=jnp.float32) / HD))
    idx = jnp.arange(S, dtype=jnp.float32)[:, None] * theta[None, :]   # [S, HD/2]
    cos = jnp.concatenate([jnp.cos(idx), jnp.cos(idx)], axis=1)        # [S, HD]
    sin = jnp.concatenate([jnp.sin(idx), jnp.sin(idx)], axis=1)        # [S, HD]

    x_bf = x.astype(jnp.bfloat16)

    kernel = functools.partial(_attention_kernel, n_heads=H, head_dim=HD,
                               q_tile=TQ, scale=scale)

    return pl.pallas_call(
        kernel,
        out_shape=jax.ShapeDtypeStruct((B, S, E), x.dtype),
        grid_spec=pltpu.PrefetchScalarGridSpec(
            num_scalar_prefetch=0,
            grid=(B, QT),
            in_specs=[
                pl.BlockSpec((1, S, E), lambda b, qt: (b, 0, 0)),    # x (full seq, resident across qt)
                pl.BlockSpec((1, TQ, E), lambda b, qt: (b, qt, 0)),  # x (q-tile rows)
                pl.BlockSpec((E, E), lambda b, qt: (0, 0)),          # WqT        (resident)
                pl.BlockSpec((E, 2 * E), lambda b, qt: (0, 0)),      # [WkT|WvT]  (resident)
                pl.BlockSpec((E, E), lambda b, qt: (0, 0)),          # WoT        (resident)
                pl.BlockSpec((S, HD), lambda b, qt: (0, 0)),         # cos (full)
                pl.BlockSpec((S, HD), lambda b, qt: (0, 0)),         # sin (full)
                pl.BlockSpec((TQ, HD), lambda b, qt: (qt, 0)),       # cos (q tile)
                pl.BlockSpec((TQ, HD), lambda b, qt: (qt, 0)),       # sin (q tile)
            ],
            out_specs=pl.BlockSpec((1, TQ, E), lambda b, qt: (b, qt, 0)),
            scratch_shapes=[
                pltpu.VMEM((S, E), jnp.bfloat16),   # RoPE'd K, all heads
                pltpu.VMEM((S, E), jnp.bfloat16),   # V, all heads
            ],
        ),
        compiler_params=pltpu.CompilerParams(
            dimension_semantics=("parallel", "arbitrary"),
            vmem_limit_bytes=64 * 1024 * 1024,
        ),
    )(x_bf, x_bf, wq, wkv, wo, cos, sin, cos, sin)


def reference_attention(x, Wq, Wk, Wv, Wo, n_heads):
    """Pure-JAX transcription of the PyTorch forward (eval mode)."""
    B, S, E = x.shape
    H = n_heads
    HD = E // H
    q = x @ Wq.T
    k = x @ Wk.T
    v = x @ Wv.T
    q = q.reshape(B, S, H, HD)
    k = k.reshape(B, S, H, HD)
    v = v.reshape(B, S, H, HD)

    theta = 1.0 / (10000.0 ** (jnp.arange(0, HD, 2, dtype=jnp.float32) / HD))
    idx = jnp.arange(S, dtype=jnp.float32)[:, None] * theta[None, :]
    cos = jnp.cos(idx)[None, :, None, :]
    sin = jnp.sin(idx)[None, :, None, :]

    def rope(t):
        t_ = t.reshape(B, S, H, HD // 2, 2)
        t0, t1 = t_[..., 0], t_[..., 1]
        return jnp.stack([t0 * cos - t1 * sin, t1 * cos + t0 * sin],
                         axis=-1).reshape(B, S, H, HD)

    q = rope(q).transpose(0, 2, 1, 3)
    k = rope(k).transpose(0, 2, 1, 3)
    v = v.transpose(0, 2, 1, 3)

    scores = jnp.einsum("bhqd,bhkd->bhqk", q, k) / math.sqrt(E)
    mask = jnp.triu(jnp.ones((S, S), dtype=bool), 1)
    scores = jnp.where(mask, -jnp.inf, scores)
    probs = jax.nn.softmax(scores, axis=-1)
    out = jnp.einsum("bhqk,bhkd->bhqd", probs, v)
    out = out.transpose(0, 2, 1, 3).reshape(B, S, E)
    return out @ Wo.T


if __name__ == "__main__":
    B, S, E, H = 2, 8, 32, 4       # batch, seq, d_embed, n_heads  (head_dim = 8)

    key = jax.random.PRNGKey(0)
    kx, kq, kk, kv, ko = jax.random.split(key, 5)
    x = jax.random.normal(kx, (B, S, E), dtype=jnp.float32)

    bound = 1.0 / math.sqrt(E)     # deterministic synthetic Linear weights
    Wq = jax.random.uniform(kq, (E, E), jnp.float32, -bound, bound)
    Wk = jax.random.uniform(kk, (E, E), jnp.float32, -bound, bound)
    Wv = jax.random.uniform(kv, (E, E), jnp.float32, -bound, bound)
    Wo = jax.random.uniform(ko, (E, E), jnp.float32, -bound, bound)

    out = attention_forward(x, Wq, Wk, Wv, Wo, H)
    out = jax.block_until_ready(out)

    ref = reference_attention(x, Wq, Wk, Wv, Wo, H)
    assert out.shape == (B, S, E) and out.dtype == jnp.float32
    # bf16 matmul operands with f32 accumulation => slightly looser tolerance
    assert jnp.allclose(out, ref, atol=2e-2, rtol=2e-2), (
        f"max abs diff {float(jnp.max(jnp.abs(out - ref)))}")

    print("KERNEL_OK")
</pallas_src>

<mosaic_0001>
module attributes {stable_mosaic.version = 11 : i64} {
  func.func @_attention_kernel(%arg0: i32, %arg1: i32, %arg2: memref<1x8x32xbf16, #tpu.memory_space<vmem>>, %arg3: memref<1x8x32xbf16, #tpu.memory_space<vmem>>, %arg4: memref<32x32xbf16, #tpu.memory_space<vmem>>, %arg5: memref<32x64xbf16, #tpu.memory_space<vmem>>, %arg6: memref<32x32xbf16, #tpu.memory_space<vmem>>, %arg7: memref<8x8xf32, #tpu.memory_space<vmem>>, %arg8: memref<8x8xf32, #tpu.memory_space<vmem>>, %arg9: memref<8x8xf32, #tpu.memory_space<vmem>>, %arg10: memref<8x8xf32, #tpu.memory_space<vmem>>, %arg11: memref<1x8x32xf32, #tpu.memory_space<vmem>>, %arg12: memref<8x32xbf16, #tpu.memory_space<vmem>>, %arg13: memref<8x32xbf16, #tpu.memory_space<vmem>>) attributes {dimension_semantics = [#tpu.dimension_semantics<parallel>, #tpu.dimension_semantics<arbitrary>], iteration_bounds = array<i64: 2, 1>, scalar_prefetch = 0 : i64, scratch_operands = 2 : i64, tpu.core_type = #tpu.core_type<tc>, window_params = [{transform_indices = @transform_0, window_bounds = array<i64: 1, 8, 32>}, {transform_indices = @transform_1, window_bounds = array<i64: 1, 8, 32>}, {pipeline_mode = #tpu.pipeline_mode<synchronous>, transform_indices = @transform_2, window_bounds = array<i64: 32, 32>}, {pipeline_mode = #tpu.pipeline_mode<synchronous>, transform_indices = @transform_3, window_bounds = array<i64: 32, 64>}, {pipeline_mode = #tpu.pipeline_mode<synchronous>, transform_indices = @transform_4, window_bounds = array<i64: 32, 32>}, {pipeline_mode = #tpu.pipeline_mode<synchronous>, transform_indices = @transform_5, window_bounds = array<i64: 8, 8>}, {pipeline_mode = #tpu.pipeline_mode<synchronous>, transform_indices = @transform_6, window_bounds = array<i64: 8, 8>}, {transform_indices = @transform_7, window_bounds = array<i64: 8, 8>}, {transform_indices = @transform_8, window_bounds = array<i64: 8, 8>}, {transform_indices = @transform_9, window_bounds = array<i64: 1, 8, 32>}]} {
    %c0_i32 = arith.constant 0 : i32
    %0 = arith.cmpi eq, %arg1, %c0_i32 : i32
    %1 = arith.extui %0 : i1 to i32
    %c0_i32_0 = arith.constant 0 : i32
    %2 = arith.cmpi ne, %1, %c0_i32_0 : i32
    scf.if %2 {
      %c0_47 = arith.constant 0 : index
      %c0_48 = arith.constant 0 : index
      %c0_49 = arith.constant 0 : index
      %140 = vector.load %arg2[%c0_47, %c0_48, %c0_49] : memref<1x8x32xbf16, #tpu.memory_space<vmem>>, vector<1x8x32xbf16>
      %141 = vector.shape_cast %140 : vector<1x8x32xbf16> to vector<8x32xbf16>
      %c0_50 = arith.constant 0 : index
      %c0_51 = arith.constant 0 : index
      %142 = vector.load %arg5[%c0_50, %c0_51] : memref<32x64xbf16, #tpu.memory_space<vmem>>, vector<32x64xbf16>
      %cst_52 = arith.constant dense<0.000000e+00> : vector<8x64xf32>
      %143 = tpu.matmul %141, %142, %cst_52 {dimension_numbers = #tpu.dot_dimension_numbers<[1], [0], [0], [1], [0, 0, 1, 1], [], []>} : vector<8x32xbf16>, vector<32x64xbf16>, vector<8x64xf32> -> vector<8x64xf32>
      %c0_53 = arith.constant 0 : index
      %c0_54 = arith.constant 0 : index
      %144 = vector.load %arg7[%c0_53, %c0_54] : memref<8x8xf32, #tpu.memory_space<vmem>>, vector<8x8xf32>
      %c0_55 = arith.constant 0 : index
      %c0_56 = arith.constant 0 : index
      %145 = vector.load %arg8[%c0_55, %c0_56] : memref<8x8xf32, #tpu.memory_space<vmem>>, vector<8x8xf32>
      %146 = vector.extract_strided_slice %143 {offsets = [0, 0], sizes = [8, 8], strides = [1, 1]} : vector<8x64xf32> to vector<8x8xf32>
      %147 = vector.extract_strided_slice %146 {offsets = [0, 0], sizes = [8, 4], strides = [1, 1]} : vector<8x8xf32> to vector<8x4xf32>
      %148 = vector.extract_strided_slice %146 {offsets = [0, 4], sizes = [8, 4], strides = [1, 1]} : vector<8x8xf32> to vector<8x4xf32>
      %cst_57 = arith.constant 0.000000e+00 : f32
      %149 = vector.broadcast %cst_57 : f32 to vector<8x4xf32>
      %150 = arith.subf %149, %148 : vector<8x4xf32>
      %151 = tpu.concatenate %150, %147 in 1 : vector<8x4xf32>, vector<8x4xf32> -> vector<8x8xf32>
      %152 = arith.mulf %146, %144 : vector<8x8xf32>
      %153 = arith.mulf %151, %145 : vector<8x8xf32>
      %154 = arith.addf %152, %153 : vector<8x8xf32>
      %155 = vector.extract_strided_slice %143 {offsets = [0, 8], sizes = [8, 8], strides = [1, 1]} : vector<8x64xf32> to vector<8x8xf32>
      %156 = vector.extract_strided_slice %155 {offsets = [0, 0], sizes = [8, 4], strides = [1, 1]} : vector<8x8xf32> to vector<8x4xf32>
      %157 = vector.extract_strided_slice %155 {offsets = [0, 4], sizes = [8, 4], strides = [1, 1]} : vector<8x8xf32> to vector<8x4xf32>
      %cst_58 = arith.constant 0.000000e+00 : f32
      %158 = vector.broadcast %cst_58 : f32 to vector<8x4xf32>
      %159 = arith.subf %158, %157 : vector<8x4xf32>
      %160 = tpu.concatenate %159, %156 in 1 : vector<8x4xf32>, vector<8x4xf32> -> vector<8x8xf32>
      %161 = arith.mulf %155, %144 : vector<8x8xf32>
      %162 = arith.mulf %160, %145 : vector<8x8xf32>
      %163 = arith.addf %161, %162 : vector<8x8xf32>
      %164 = vector.extract_strided_slice %143 {offsets = [0, 16], sizes = [8, 8], strides = [1, 1]} : vector<8x64xf32> to vector<8x8xf32>
      %165 = vector.extract_strided_slice %164 {offsets = [0, 0], sizes = [8, 4], strides = [1, 1]} : vector<8x8xf32> to vector<8x4xf32>
      %166 = vector.extract_strided_slice %164 {offsets = [0, 4], sizes = [8, 4], strides = [1, 1]} : vector<8x8xf32> to vector<8x4xf32>
      %cst_59 = arith.constant 0.000000e+00 : f32
      %167 = vector.broadcast %cst_59 : f32 to vector<8x4xf32>
      %168 = arith.subf %167, %166 : vector<8x4xf32>
      %169 = tpu.concatenate %168, %165 in 1 : vector<8x4xf32>, vector<8x4xf32> -> vector<8x8xf32>
      %170 = arith.mulf %164, %144 : vector<8x8xf32>
      %171 = arith.mulf %169, %145 : vector<8x8xf32>
      %172 = arith.addf %170, %171 : vector<8x8xf32>
      %173 = vector.extract_strided_slice %143 {offsets = [0, 24], sizes = [8, 8], strides = [1, 1]} : vector<8x64xf32> to vector<8x8xf32>
      %174 = vector.extract_strided_slice %173 {offsets = [0, 0], sizes = [8, 4], strides = [1, 1]} : vector<8x8xf32> to vector<8x4xf32>
      %175 = vector.extract_strided_slice %173 {offsets = [0, 4], sizes = [8, 4], strides = [1, 1]} : vector<8x8xf32> to vector<8x4xf32>
      %cst_60 = arith.constant 0.000000e+00 : f32
      %176 = vector.broadcast %cst_60 : f32 to vector<8x4xf32>
      %177 = arith.subf %176, %175 : vector<8x4xf32>
      %178 = tpu.concatenate %177, %174 in 1 : vector<8x4xf32>, vector<8x4xf32> -> vector<8x8xf32>
      %179 = arith.mulf %173, %144 : vector<8x8xf32>
      %180 = arith.mulf %178, %145 : vector<8x8xf32>
      %181 = arith.addf %179, %180 : vector<8x8xf32>
      %182 = tpu.concatenate %154, %163, %172, %181 in 1 : vector<8x8xf32>, vector<8x8xf32>, vector<8x8xf32>, vector<8x8xf32> -> vector<8x32xf32>
      %183 = arith.truncf %182 : vector<8x32xf32> to vector<8x32xbf16>
      %c0_61 = arith.constant 0 : index
      %c0_62 = arith.constant 0 : index
      %184 = vector.load %arg12[%c0_61, %c0_62] : memref<8x32xbf16, #tpu.memory_space<vmem>>, vector<8x32xbf16>
      tpu.vector_store %arg12[%c0_61, %c0_62], %183 {strides = array<i32>} : memref<8x32xbf16, #tpu.memory_space<vmem>>, vector<8x32xbf16>,
      %185 = vector.extract_strided_slice %143 {offsets = [0, 32], sizes = [8, 32], strides = [1, 1]} : vector<8x64xf32> to vector<8x32xf32>
      %186 = arith.truncf %185 : vector<8x32xf32> to vector<8x32xbf16>
      %c0_63 = arith.constant 0 : index
      %c0_64 = arith.constant 0 : index
      %187 = vector.load %arg13[%c0_63, %c0_64] : memref<8x32xbf16, #tpu.memory_space<vmem>>, vector<8x32xbf16>
      tpu.vector_store %arg13[%c0_63, %c0_64], %186 {strides = array<i32>} : memref<8x32xbf16, #tpu.memory_space<vmem>>, vector<8x32xbf16>,
    } else {
    }
    %c0 = arith.constant 0 : index
    %c0_1 = arith.constant 0 : index
    %c0_2 = arith.constant 0 : index
    %3 = vector.load %arg3[%c0, %c0_1, %c0_2] : memref<1x8x32xbf16, #tpu.memory_space<vmem>>, vector<1x8x32xbf16>
    %4 = vector.shape_cast %3 : vector<1x8x32xbf16> to vector<8x32xbf16>
    %c0_3 = arith.constant 0 : index
    %c0_4 = arith.constant 0 : index
    %5 = vector.load %arg4[%c0_3, %c0_4] : memref<32x32xbf16, #tpu.memory_space<vmem>>, vector<32x32xbf16>
    %cst = arith.constant dense<0.000000e+00> : vector<8x32xf32>
    %6 = tpu.matmul %4, %5, %cst {dimension_numbers = #tpu.dot_dimension_numbers<[1], [0], [0], [1], [0, 0, 1, 1], [], []>} : vector<8x32xbf16>, vector<32x32xbf16>, vector<8x32xf32> -> vector<8x32xf32>
    %c0_5 = arith.constant 0 : index
    %c0_6 = arith.constant 0 : index
    %7 = vector.load %arg9[%c0_5, %c0_6] : memref<8x8xf32, #tpu.memory_space<vmem>>, vector<8x8xf32>
    %c0_7 = arith.constant 0 : index
    %c0_8 = arith.constant 0 : index
    %8 = vector.load %arg10[%c0_7, %c0_8] : memref<8x8xf32, #tpu.memory_space<vmem>>, vector<8x8xf32>
    %c8_i32 = arith.constant 8 : i32
    %9 = arith.muli %arg1, %c8_i32 : i32
    %10 = tpu.iota {dimensions = array<i32: 0>} : vector<8x8xi32>
    %11 = vector.broadcast %9 : i32 to vector<8x8xi32>
    %12 = arith.addi %11, %10 : vector<8x8xi32>
    %13 = tpu.iota {dimensions = array<i32: 1>} : vector<8x8xi32>
    %14 = arith.cmpi sle, %13, %12 : vector<8x8xi32>
    %c0_9 = arith.constant 0 : index
    %c0_10 = arith.constant 0 : index
    %15 = vector.load %arg12[%c0_9, %c0_10] : memref<8x32xbf16, #tpu.memory_space<vmem>>, vector<8x32xbf16>
    %c0_11 = arith.constant 0 : index
    %c0_12 = arith.constant 0 : index
    %16 = vector.load %arg13[%c0_11, %c0_12] : memref<8x32xbf16, #tpu.memory_space<vmem>>, vector<8x32xbf16>
    %17 = vector.extract_strided_slice %6 {offsets = [0, 0], sizes = [8, 8], strides = [1, 1]} : vector<8x32xf32> to vector<8x8xf32>
    %18 = vector.extract_strided_slice %17 {offsets = [0, 0], sizes = [8, 4], strides = [1, 1]} : vector<8x8xf32> to vector<8x4xf32>
    %19 = vector.extract_strided_slice %17 {offsets = [0, 4], sizes = [8, 4], strides = [1, 1]} : vector<8x8xf32> to vector<8x4xf32>
    %cst_13 = arith.constant 0.000000e+00 : f32
    %20 = vector.broadcast %cst_13 : f32 to vector<8x4xf32>
    %21 = arith.subf %20, %19 : vector<8x4xf32>
    %22 = tpu.concatenate %21, %18 in 1 : vector<8x4xf32>, vector<8x4xf32> -> vector<8x8xf32>
    %23 = arith.mulf %17, %7 : vector<8x8xf32>
    %24 = arith.mulf %22, %8 : vector<8x8xf32>
    %25 = arith.addf %23, %24 : vector<8x8xf32>
    %26 = arith.truncf %25 : vector<8x8xf32> to vector<8x8xbf16>
    %27 = vector.extract_strided_slice %15 {offsets = [0, 0], sizes = [8, 8], strides = [1, 1]} : vector<8x32xbf16> to vector<8x8xbf16>
    %28 = vector.extract_strided_slice %16 {offsets = [0, 0], sizes = [8, 8], strides = [1, 1]} : vector<8x32xbf16> to vector<8x8xbf16>
    %cst_14 = arith.constant dense<0.000000e+00> : vector<8x8xf32>
    %29 = tpu.matmul %26, %27, %cst_14 {dimension_numbers = #tpu.dot_dimension_numbers<[1], [1], [0], [0], [0, 0, 1, 0], [], []>} : vector<8x8xbf16>, vector<8x8xbf16>, vector<8x8xf32> -> vector<8x8xf32>
    %cst_15 = arith.constant 0.176776692 : f32
    %30 = vector.broadcast %cst_15 : f32 to vector<8x8xf32>
    %31 = arith.mulf %29, %30 : vector<8x8xf32>
    %cst_16 = arith.constant 0xFF800000 : f32
    %32 = vector.broadcast %cst_16 : f32 to vector<8x8xf32>
    %33 = arith.select %14, %31, %32 : vector<8x8xi1>, vector<8x8xf32>
    %cst_17 = arith.constant dense<0xFF800000> : vector<8xf32>
    %34 = vector.multi_reduction <maximumf>, %33, %cst_17 [1] : vector<8x8xf32> to vector<8xf32>
    %35 = vector.shape_cast %34 : vector<8xf32> to vector<8x1xf32>
    %36 = vector.broadcast %35 : vector<8x1xf32> to vector<8x8xf32>
    %37 = arith.subf %33, %36 : vector<8x8xf32>
    %38 = math.exp %37 : vector<8x8xf32>
    %cst_18 = arith.constant dense<0.000000e+00> : vector<8xf32>
    %39 = vector.multi_reduction <add>, %38, %cst_18 [1] : vector<8x8xf32> to vector<8xf32>
    %40 = vector.shape_cast %39 : vector<8xf32> to vector<8x1xf32>
    %41 = tpu.reciprocal %40 {approx = true} : vector<8x1xf32> -> vector<8x1xf32>
    %42 = vector.broadcast %41 : vector<8x1xf32> to vector<8x8xf32>
    %43 = arith.mulf %38, %42 : vector<8x8xf32>
    %44 = arith.truncf %43 : vector<8x8xf32> to vector<8x8xbf16>
    %cst_19 = arith.constant dense<0.000000e+00> : vector<8x8xf32>
    %45 = tpu.matmul %44, %28, %cst_19 {dimension_numbers = #tpu.dot_dimension_numbers<[1], [0], [0], [1], [0, 0, 1, 1], [], []>} : vector<8x8xbf16>, vector<8x8xbf16>, vector<8x8xf32> -> vector<8x8xf32>
    %46 = vector.extract_strided_slice %6 {offsets = [0, 8], sizes = [8, 8], strides = [1, 1]} : vector<8x32xf32> to vector<8x8xf32>
    %47 = vector.extract_strided_slice %46 {offsets = [0, 0], sizes = [8, 4], strides = [1, 1]} : vector<8x8xf32> to vector<8x4xf32>
    %48 = vector.extract_strided_slice %46 {offsets = [0, 4], sizes = [8, 4], strides = [1, 1]} : vector<8x8xf32> to vector<8x4xf32>
    %cst_20 = arith.constant 0.000000e+00 : f32
    %49 = vector.broadcast %cst_20 : f32 to vector<8x4xf32>
    %50 = arith.subf %49, %48 : vector<8x4xf32>
    %51 = tpu.concatenate %50, %47 in 1 : vector<8x4xf32>, vector<8x4xf32> -> vector<8x8xf32>
    %52 = arith.mulf %46, %7 : vector<8x8xf32>
    %53 = arith.mulf %51, %8 : vector<8x8xf32>
    %54 = arith.addf %52, %53 : vector<8x8xf32>
    %55 = arith.truncf %54 : vector<8x8xf32> to vector<8x8xbf16>
    %56 = vector.extract_strided_slice %15 {offsets = [0, 8], sizes = [8, 8], strides = [1, 1]} : vector<8x32xbf16> to vector<8x8xbf16>
    %57 = vector.extract_strided_slice %16 {offsets = [0, 8], sizes = [8, 8], strides = [1, 1]} : vector<8x32xbf16> to vector<8x8xbf16>
    %cst_21 = arith.constant dense<0.000000e+00> : vector<8x8xf32>
    %58 = tpu.matmul %55, %56, %cst_21 {dimension_numbers = #tpu.dot_dimension_numbers<[1], [1], [0], [0], [0, 0, 1, 0], [], []>} : vector<8x8xbf16>, vector<8x8xbf16>, vector<8x8xf32> -> vector<8x8xf32>
    %cst_22 = arith.constant 0.176776692 : f32
    %59 = vector.broadcast %cst_22 : f32 to vector<8x8xf32>
    %60 = arith.mulf %58, %59 : vector<8x8xf32>
    %cst_23 = arith.constant 0xFF800000 : f32
    %61 = vector.broadcast %cst_23 : f32 to vector<8x8xf32>
    %62 = arith.select %14, %60, %61 : vector<8x8xi1>, vector<8x8xf32>
    %cst_24 = arith.constant dense<0xFF800000> : vector<8xf32>
    %63 = vector.multi_reduction <maximumf>, %62, %cst_24 [1] : vector<8x8xf32> to vector<8xf32>
    %64 = vector.shape_cast %63 : vector<8xf32> to vector<8x1xf32>
    %65 = vector.broadcast %64 : vector<8x1xf32> to vector<8x8xf32>
    %66 = arith.subf %62, %65 : vector<8x8xf32>
    %67 = math.exp %66 : vector<8x8xf32>
    %cst_25 = arith.constant dense<0.000000e+00> : vector<8xf32>
    %68 = vector.multi_reduction <add>, %67, %cst_25 [1] : vector<8x8xf32> to vector<8xf32>
    %69 = vector.shape_cast %68 : vector<8xf32> to vector<8x1xf32>
    %70 = tpu.reciprocal %69 {approx = true} : vector<8x1xf32> -> vector<8x1xf32>
    %71 = vector.broadcast %70 : vector<8x1xf32> to vector<8x8xf32>
    %72 = arith.mulf %67, %71 : vector<8x8xf32>
    %73 = arith.truncf %72 : vector<8x8xf32> to vector<8x8xbf16>
    %cst_26 = arith.constant dense<0.000000e+00> : vector<8x8xf32>
    %74 = tpu.matmul %73, %57, %cst_26 {dimension_numbers = #tpu.dot_dimension_numbers<[1], [0], [0], [1], [0, 0, 1, 1], [], []>} : vector<8x8xbf16>, vector<8x8xbf16>, vector<8x8xf32> -> vector<8x8xf32>
    %75 = vector.extract_strided_slice %6 {offsets = [0, 16], sizes = [8, 8], strides = [1, 1]} : vector<8x32xf32> to vector<8x8xf32>
    %76 = vector.extract_strided_slice %75 {offsets = [0, 0], sizes = [8, 4], strides = [1, 1]} : vector<8x8xf32> to vector<8x4xf32>
    %77 = vector.extract_strided_slice %75 {offsets = [0, 4], sizes = [8, 4], strides = [1, 1]} : vector<8x8xf32> to vector<8x4xf32>
    %cst_27 = arith.constant 0.000000e+00 : f32
    %78 = vector.broadcast %cst_27 : f32 to vector<8x4xf32>
    %79 = arith.subf %78, %77 : vector<8x4xf32>
    %80 = tpu.concatenate %79, %76 in 1 : vector<8x4xf32>, vector<8x4xf32> -> vector<8x8xf32>
    %81 = arith.mulf %75, %7 : vector<8x8xf32>
    %82 = arith.mulf %80, %8 : vector<8x8xf32>
    %83 = arith.addf %81, %82 : vector<8x8xf32>
    %84 = arith.truncf %83 : vector<8x8xf32> to vector<8x8xbf16>
    %85 = vector.extract_strided_slice %15 {offsets = [0, 16], sizes = [8, 8], strides = [1, 1]} : vector<8x32xbf16> to vector<8x8xbf16>
    %86 = vector.extract_strided_slice %16 {offsets = [0, 16], sizes = [8, 8], strides = [1, 1]} : vector<8x32xbf16> to vector<8x8xbf16>
    %cst_28 = arith.constant dense<0.000000e+00> : vector<8x8xf32>
    %87 = tpu.matmul %84, %85, %cst_28 {dimension_numbers = #tpu.dot_dimension_numbers<[1], [1], [0], [0], [0, 0, 1, 0], [], []>} : vector<8x8xbf16>, vector<8x8xbf16>, vector<8x8xf32> -> vector<8x8xf32>
    %cst_29 = arith.constant 0.176776692 : f32
    %88 = vector.broadcast %cst_29 : f32 to vector<8x8xf32>
    %89 = arith.mulf %87, %88 : vector<8x8xf32>
    %cst_30 = arith.constant 0xFF800000 : f32
    %90 = vector.broadcast %cst_30 : f32 to vector<8x8xf32>
    %91 = arith.select %14, %89, %90 : vector<8x8xi1>, vector<8x8xf32>
    %cst_31 = arith.constant dense<0xFF800000> : vector<8xf32>
    %92 = vector.multi_reduction <maximumf>, %91, %cst_31 [1] : vector<8x8xf32> to vector<8xf32>
    %93 = vector.shape_cast %92 : vector<8xf32> to vector<8x1xf32>
    %94 = vector.broadcast %93 : vector<8x1xf32> to vector<8x8xf32>
    %95 = arith.subf %91, %94 : vector<8x8xf32>
    %96 = math.exp %95 : vector<8x8xf32>
    %cst_32 = arith.constant dense<0.000000e+00> : vector<8xf32>
    %97 = vector.multi_reduction <add>, %96, %cst_32 [1] : vector<8x8xf32> to vector<8xf32>
    %98 = vector.shape_cast %97 : vector<8xf32> to vector<8x1xf32>
    %99 = tpu.reciprocal %98 {approx = true} : vector<8x1xf32> -> vector<8x1xf32>
    %100 = vector.broadcast %99 : vector<8x1xf32> to vector<8x8xf32>
    %101 = arith.mulf %96, %100 : vector<8x8xf32>
    %102 = arith.truncf %101 : vector<8x8xf32> to vector<8x8xbf16>
    %cst_33 = arith.constant dense<0.000000e+00> : vector<8x8xf32>
    %103 = tpu.matmul %102, %86, %cst_33 {dimension_numbers = #tpu.dot_dimension_numbers<[1], [0], [0], [1], [0, 0, 1, 1], [], []>} : vector<8x8xbf16>, vector<8x8xbf16>, vector<8x8xf32> -> vector<8x8xf32>
    %104 = vector.extract_strided_slice %6 {offsets = [0, 24], sizes = [8, 8], strides = [1, 1]} : vector<8x32xf32> to vector<8x8xf32>
    %105 = vector.extract_strided_slice %104 {offsets = [0, 0], sizes = [8, 4], strides = [1, 1]} : vector<8x8xf32> to vector<8x4xf32>
    %106 = vector.extract_strided_slice %104 {offsets = [0, 4], sizes = [8, 4], strides = [1, 1]} : vector<8x8xf32> to vector<8x4xf32>
    %cst_34 = arith.constant 0.000000e+00 : f32
    %107 = vector.broadcast %cst_34 : f32 to vector<8x4xf32>
    %108 = arith.subf %107, %106 : vector<8x4xf32>
    %109 = tpu.concatenate %108, %105 in 1 : vector<8x4xf32>, vector<8x4xf32> -> vector<8x8xf32>
    %110 = arith.mulf %104, %7 : vector<8x8xf32>
    %111 = arith.mulf %109, %8 : vector<8x8xf32>
    %112 = arith.addf %110, %111 : vector<8x8xf32>
    %113 = arith.truncf %112 : vector<8x8xf32> to vector<8x8xbf16>
    %114 = vector.extract_strided_slice %15 {offsets = [0, 24], sizes = [8, 8], strides = [1, 1]} : vector<8x32xbf16> to vector<8x8xbf16>
    %115 = vector.extract_strided_slice %16 {offsets = [0, 24], sizes = [8, 8], strides = [1, 1]} : vector<8x32xbf16> to vector<8x8xbf16>
    %cst_35 = arith.constant dense<0.000000e+00> : vector<8x8xf32>
    %116 = tpu.matmul %113, %114, %cst_35 {dimension_numbers = #tpu.dot_dimension_numbers<[1], [1], [0], [0], [0, 0, 1, 0], [], []>} : vector<8x8xbf16>, vector<8x8xbf16>, vector<8x8xf32> -> vector<8x8xf32>
    %cst_36 = arith.constant 0.176776692 : f32
    %117 = vector.broadcast %cst_36 : f32 to vector<8x8xf32>
    %118 = arith.mulf %116, %117 : vector<8x8xf32>
    %cst_37 = arith.constant 0xFF800000 : f32
    %119 = vector.broadcast %cst_37 : f32 to vector<8x8xf32>
    %120 = arith.select %14, %118, %119 : vector<8x8xi1>, vector<8x8xf32>
    %cst_38 = arith.constant dense<0xFF800000> : vector<8xf32>
    %121 = vector.multi_reduction <maximumf>, %120, %cst_38 [1] : vector<8x8xf32> to vector<8xf32>
    %122 = vector.shape_cast %121 : vector<8xf32> to vector<8x1xf32>
    %123 = vector.broadcast %122 : vector<8x1xf32> to vector<8x8xf32>
    %124 = arith.subf %120, %123 : vector<8x8xf32>
    %125 = math.exp %124 : vector<8x8xf32>
    %cst_39 = arith.constant dense<0.000000e+00> : vector<8xf32>
    %126 = vector.multi_reduction <add>, %125, %cst_39 [1] : vector<8x8xf32> to vector<8xf32>
    %127 = vector.shape_cast %126 : vector<8xf32> to vector<8x1xf32>
    %128 = tpu.reciprocal %127 {approx = true} : vector<8x1xf32> -> vector<8x1xf32>
    %129 = vector.broadcast %128 : vector<8x1xf32> to vector<8x8xf32>
    %130 = arith.mulf %125, %129 : vector<8x8xf32>
    %131 = arith.truncf %130 : vector<8x8xf32> to vector<8x8xbf16>
    %cst_40 = arith.constant dense<0.000000e+00> : vector<8x8xf32>
    %132 = tpu.matmul %131, %115, %cst_40 {dimension_numbers = #tpu.dot_dimension_numbers<[1], [0], [0], [1], [0, 0, 1, 1], [], []>} : vector<8x8xbf16>, vector<8x8xbf16>, vector<8x8xf32> -> vector<8x8xf32>
    %133 = tpu.concatenate %45, %74, %103, %132 in 1 : vector<8x8xf32>, vector<8x8xf32>, vector<8x8xf32>, vector<8x8xf32> -> vector<8x32xf32>
    %134 = arith.truncf %133 : vector<8x32xf32> to vector<8x32xbf16>
    %c0_41 = arith.constant 0 : index
    %c0_42 = arith.constant 0 : index
    %135 = vector.load %arg6[%c0_41, %c0_42] : memref<32x32xbf16, #tpu.memory_space<vmem>>, vector<32x32xbf16>
    %cst_43 = arith.constant dense<0.000000e+00> : vector<8x32xf32>
    %136 = tpu.matmul %134, %135, %cst_43 {dimension_numbers = #tpu.dot_dimension_numbers<[1], [0], [0], [1], [0, 0, 1, 1], [], []>} : vector<8x32xbf16>, vector<32x32xbf16>, vector<8x32xf32> -> vector<8x32xf32>
    %c0_44 = arith.constant 0 : index
    %c0_45 = arith.constant 0 : index
    %c0_46 = arith.constant 0 : index
    %137 = vector.load %arg11[%c0_44, %c0_45, %c0_46] : memref<1x8x32xf32, #tpu.memory_space<vmem>>, vector<1x8x32xf32>
    %138 = vector.shape_cast %137 : vector<1x8x32xf32> to vector<8x32xf32>
    %139 = vector.shape_cast %136 : vector<8x32xf32> to vector<1x8x32xf32>
    tpu.vector_store %arg11[%c0_44, %c0_45, %c0_46], %139 {strides = array<i32>} : memref<1x8x32xf32, #tpu.memory_space<vmem>>, vector<1x8x32xf32>,
    return
  }
  func.func @transform_0(%arg0: i32, %arg1: i32) -> (i32, i32, i32) {
    %c0_i32 = arith.constant 0 : i32
    %c0_i32_0 = arith.constant 0 : i32
    %c0_i32_1 = arith.constant 0 : i32
    return %arg0, %c0_i32, %c0_i32_0 : i32, i32, i32
  }
  func.func @transform_1(%arg0: i32, %arg1: i32) -> (i32, i32, i32) {
    %c0_i32 = arith.constant 0 : i32
    %c0_i32_0 = arith.constant 0 : i32
    return %arg0, %arg1, %c0_i32 : i32, i32, i32
  }
  func.func @transform_2(%arg0: i32, %arg1: i32) -> (i32, i32) {
    %c0_i32 = arith.constant 0 : i32
    %c0_i32_0 = arith.constant 0 : i32
    %c0_i32_1 = arith.constant 0 : i32
    return %c0_i32, %c0_i32_0 : i32, i32
  }
  func.func @transform_3(%arg0: i32, %arg1: i32) -> (i32, i32) {
    %c0_i32 = arith.constant 0 : i32
    %c0_i32_0 = arith.constant 0 : i32
    %c0_i32_1 = arith.constant 0 : i32
    return %c0_i32, %c0_i32_0 : i32, i32
  }
  func.func @transform_4(%arg0: i32, %arg1: i32) -> (i32, i32) {
    %c0_i32 = arith.constant 0 : i32
    %c0_i32_0 = arith.constant 0 : i32
    %c0_i32_1 = arith.constant 0 : i32
    return %c0_i32, %c0_i32_0 : i32, i32
  }
  func.func @transform_5(%arg0: i32, %arg1: i32) -> (i32, i32) {
    %c0_i32 = arith.constant 0 : i32
    %c0_i32_0 = arith.constant 0 : i32
    %c0_i32_1 = arith.constant 0 : i32
    return %c0_i32, %c0_i32_0 : i32, i32
  }
  func.func @transform_6(%arg0: i32, %arg1: i32) -> (i32, i32) {
    %c0_i32 = arith.constant 0 : i32
    %c0_i32_0 = arith.constant 0 : i32
    %c0_i32_1 = arith.constant 0 : i32
    return %c0_i32, %c0_i32_0 : i32, i32
  }
  func.func @transform_7(%arg0: i32, %arg1: i32) -> (i32, i32) {
    %c0_i32 = arith.constant 0 : i32
    %c0_i32_0 = arith.constant 0 : i32
    return %arg1, %c0_i32 : i32, i32
  }
  func.func @transform_8(%arg0: i32, %arg1: i32) -> (i32, i32) {
    %c0_i32 = arith.constant 0 : i32
    %c0_i32_0 = arith.constant 0 : i32
    return %arg1, %c0_i32 : i32, i32
  }
  func.func @transform_9(%arg0: i32, %arg1: i32) -> (i32, i32, i32) {
    %c0_i32 = arith.constant 0 : i32
    %c0_i32_0 = arith.constant 0 : i32
    return %arg0, %arg1, %c0_i32 : i32, i32, i32
  }
}

</mosaic_0001>

<bundles_post_ra>
// kernel: tpu_custom_call.1
= control target key start
LH: loop header
LB: loop body
LE: loop exit
PB: predicated region body
PF: predicated region fallthrough
CT: control target
= control target key end

     0   :  { %s2257_s0 = inlined_call_operand.hbm [shape: bf16[2,8,32], index: 0, kind: input, shape index: {}]   ;;  %s2258_s1 = inlined_call_operand.hbm [shape: bf16[2,8,32], index: 1, kind: input, shape index: {}]   ;;  %s2259_s2 = inlined_call_operand.hbm [shape: bf16[32,32], index: 2, kind: input, shape index: {}]   ;;  %s2260_s3 = inlined_call_operand.hbm [shape: bf16[32,64], index: 3, kind: input, shape index: {}]   ;;  %s2261_s4 = inlined_call_operand.hbm [shape: bf16[32,32], index: 4, kind: input, shape index: {}]   ;;  %s2262_s5 = inlined_call_operand.hbm [shape: f32[8,8], index: 5, kind: input, shape index: {}]   ;;  %s2263_s6 = inlined_call_operand.hbm [shape: f32[8,8], index: 6, kind: input, shape index: {}]   ;;  %s2264_s7 = inlined_call_operand.hbm [shape: f32[8,8], index: 7, kind: input, shape index: {}]   ;;  %s2265_s8 = inlined_call_operand.hbm [shape: f32[8,8], index: 8, kind: input, shape index: {}]   ;;  %s2266_s9 = inlined_call_operand.hbm [shape: f32[2,8,32], index: 9, kind: output, shape index: {}]  }
   0x1   :  { %2270 = sst [smem:[#allocation29_spill]] %s2259_s2 }
   0x2   :  { %2271 = sst [smem:[#allocation30_spill]] %s2260_s3 }
   0x3   :  { %2272 = sst [smem:[#allocation31_spill]] %s2261_s4 }
   0x4   :  { %2273 = sst [smem:[#allocation32_spill]] %s2262_s5 }
   0x5   :  { %2274 = sst [smem:[#allocation33_spill]] %s2263_s6 }
   0x6   :  { %2275 = sst [smem:[#allocation34_spill]] %s2264_s7 }
   0x7   :  { %2276 = sst [smem:[#allocation35_spill]] %s2265_s8 }
   0x8   :  { %2277 = sst [smem:[#allocation36_spill]] %s2266_s9 }
   0x9   :  { %14 = vsyncpa [#allocation5], 0 }
   0xa   :  { %16 = vsyncpa [#allocation5 + $0x1], 0 }
   0xb   :  { %17 = vsyncpa [#allocation8], 0 }
   0xc   :  { %19 = vsyncpa [#allocation8 + $0x1], 0 }
   0xd   :  { %20 = vsyncpa [#allocation11], 0 }
   0xe   :  { %21 = vsyncpa [#allocation14], 0 }
   0xf   :  { %22 = vsyncpa [#allocation17], 0 }
  0x10   :  { %23 = vsyncpa [#allocation6], 0 }
  0x11   :  { %25 = vsyncpa [#allocation6 + $0x1], 0  ;;  %s1927_s30 = smov 0   ;;  %s1929_s10 = smov 0  }
  0x12   :  { %s1931_s11 = smov 0   ;;  %s1933_s12 = smov 0  }
  0x13   :  { %s1935_s13 = smov 0   ;;  %s1937_s14 = smov 0  }
  0x14 LB: > { %2278 = sst [smem:[#allocation27_spill]] %s1850_s13  ;;  %s1958_s15 = sadd.s32 4294967295, %s1854_s14   ;;  %s1854_s14 = sphi %s1937_s14, %s31_s14   ;;  %s1850_s13 = sphi %s1935_s13, %s2295_s13   ;;  %s1846_s12 = sphi %s1933_s12, %s2294_s12   ;;  %s1842_s11 = sphi %s1931_s11, %s2298_s11   ;;  %s1838_s10 = sphi %s1929_s10, %s2297_s10   ;;  %s1834_s30 = sphi %s1927_s30, %s2296_s30  }
  0x15   : > { %p1245_p0 = scmp.ge.s32.totalorder %s1854_s14, 1  ;;  %p64_p1 = scmp.eq.s32.totalorder %s1958_s15, 0 }
  0x16   : > { %p287_p2 = scmp.lt.s32.totalorder %s1854_s14, 3  ;;  %s2279_s2 = sld [smem:[#allocation29_spill]] }
  0x17   : > { %s1856_s20 = smov [#allocation9]   ;;  %p1253_p6 = scmp.ge.s32.totalorder %s1854_s14, 2 }
  0x18   : > { %p1966_p3 = pnand %p1245_p0, %p287_p2  ;;  %s300_s21 = sshll.u32 %s1856_s20, 4  ;;  %s301_s21 = int_to_ptr.vmem [resolvable:$true] %s300_s21 }
  0x19   : > { %s2282_s3 = sld [smem:[#allocation30_spill]]  ;;  %s1857_s26 = smov 64  }
  0x1a   : > { %p1348_p4 = pneg %p1966_p3  ;;  %s1858_s27 = smov 4  }
  0x1b   : > { %s1859_s28 = smov [#allocation10]   ;;  %s2283_s5 = sld [smem:[#allocation32_spill]] }
  0x1c   : > { %s298_s18 = sshll.u32 %s2279_s2, 4  ;;  %p1974_p5 = pnand %p1348_p4, %p64_p1  ;;  %s299_s18 = int_to_ptr.hbm [resolvable:$true] %s298_s18 }
  0x1d   : > { %s314_s29 = sshll.u32 %s1859_s28, 4  ;;  %s2284_s7 = sld [smem:[#allocation34_spill]]  ;;  %s315_s29 = int_to_ptr.vmem [resolvable:$true] %s314_s29 }
  0x1e   : > { %1351 = dma.hbm_to_vmem [thread:$0]  (!%p1974_p5), %s299_s18, 256, %s301_s21, [#allocation8], %s1857_s26, %s1857_s26, %s1858_s27  }
  0x1f   : > { %s312_s25 = sshll.u32 %s2282_s3, 4  ;;  %s1860_s3 = smov [#allocation13]   ;;  %s313_s25 = int_to_ptr.hbm [resolvable:$true] %s312_s25 }
  0x20   : > { %1354 = dma.hbm_to_vmem [thread:$0]  (!%p1974_p5), %s313_s25, 256, %s315_s29, [#allocation11], %s1857_s26, %s1857_s26, %s1858_s27  }
  0x21   : > { %s341_s20 = sshll.u32 %s2283_s5, 4  ;;  %s343_s9 = sshll.u32 %s1860_s3, 4  ;;  %s342_s20 = int_to_ptr.hbm [resolvable:$true] %s341_s20  ;;  %s344_s9 = int_to_ptr.vmem [resolvable:$true] %s343_s9 }
  0x22   : > { %1360 = dma.hbm_to_vmem [thread:$0]  (!%p1974_p5), %s342_s20, 128, %s344_s9, [#allocation14]  }
  0x23   : > { %s367_s24 = sshll.u32 %s2284_s7, 4  ;;  %s1861_s18 = smov [#allocation16]   ;;  %s368_s24 = int_to_ptr.hbm [resolvable:$true] %s367_s24 }
  0x24   : > { %s369_s21 = sshll.u32 %s1861_s18, 4  ;;  %s2285_s4 = sld [smem:[#allocation31_spill]]  ;;  %s370_s21 = int_to_ptr.vmem [resolvable:$true] %s369_s21 }
  0x25   : > { %1366 = dma.hbm_to_vmem [thread:$0]  (!%p1974_p5), %s368_s24, 128, %s370_s21, [#allocation17]  }
  0x26   : > { %s2286_s6 = sld [smem:[#allocation33_spill]]  ;;  %s1862_s29 = smov [#allocation12]  }
  0x27   : > { %s328_s9 = sshll.u32 %s1862_s29, 4  ;;  %s1863_s20 = smov [#allocation15]   ;;  %s329_s9 = int_to_ptr.vmem [resolvable:$true] %s328_s9 }
  0x28   : > { %s355_s23 = sshll.u32 %s1863_s20, 4  ;;  %s2287_s8 = sld [smem:[#allocation35_spill]]  ;;  %s356_s23 = int_to_ptr.vmem [resolvable:$true] %s355_s23 }
  0x29   : > { %s1864_s28 = smov [#allocation18]   ;;  %p57_p8 = scmp.ne.s32.totalorder %s1842_s11, %s1838_s10 }
  0x2a   : > { %s326_s17 = sshll.u32 %s2285_s4, 4  ;;  %s383_s16 = sshll.u32 %s1864_s28, 4  ;;  %s327_s17 = int_to_ptr.hbm [resolvable:$true] %s326_s17  ;;  %s384_s16 = int_to_ptr.vmem [resolvable:$true] %s383_s16 }
  0x2b   : > { %1357 = dma.hbm_to_vmem [thread:$0]  (!%p1974_p5), %s327_s17, 256, %s329_s9, [#allocation11], %s1857_s26, %s1857_s26, %s1858_s27  }
  0x2c   : > { %s353_s3 = sshll.u32 %s2286_s6, 4  ;;  %s1244_s26 = sadd.s32 4294967294, %s1854_s14   ;;  %s354_s3 = int_to_ptr.hbm [resolvable:$true] %s353_s3 }
  0x2d   : > { %1363 = dma.hbm_to_vmem [thread:$0]  (!%p1974_p5), %s354_s3, 128, %s356_s23, [#allocation14]  }
  0x2e   : > { %s381_s21 = sshll.u32 %s2287_s8, 4  ;;  %s43_s27 = sadd.s32 1, %s1850_s13  ;;  %s382_s21 = int_to_ptr.hbm [resolvable:$true] %s381_s21 }
  0x2f   : > { %1369 = dma.hbm_to_vmem [thread:$0]  (!%p1974_p5), %s382_s21, 128, %s384_s16, [#allocation17]  }
  0x30   : > { %s50_s17 = sadd.s32 1, %s1842_s11  ;;  %p45_p7 = scmp.ge.s32.totalorder %s43_s27, 2 }
  0x31   : > { %p58_p9 = scmp.eq.s32.totalorder %s1854_s14, 0  ;;  %p63_p10 = scmp.ne.s32.totalorder %s1838_s10, %s1834_s30 }
  0x32   : > { %s2300_s27 = smov (%p45_p7, %s43_s27), 0  ;;  %p274_p13 = scmp.eq.s32.totalorder %s1958_s15, 1 }
  0x33   : > { %2288 = sst [smem:[#allocation28_spill]] %s2300_s27  ;;  %p2021_p11 = por %p58_p9, %p57_p8 }
  0x34   : > { %p2027_p12 = por %p64_p1, %p63_p10  ;;  %s47_s25 = ssub.s32 %s1850_s13, %s2300_s27 }
  0x35   : > { %p48_p0 = scmp.eq.s32.totalorder %s47_s25, 0  ;;  %p280_p2 = scmp.eq.s32.totalorder %s1244_s26, 1 }
  0x36   : > { %p2034_p4 = por %p274_p13, %p57_p8  ;;  %p1388_p5 = scmp.lt.s32.totalorder %s1854_s14, 2 }
  0x37   : > { %s2040_s29 = scalar_select %p48_p0, %s1842_s11, %s50_s17  }
  0x38   : > { %p2042_p7 = por %p280_p2, %p63_p10  ;;  %s394_s20 = sand.u32 1, %s1842_s11  }
  0x39   : > { %s1254_s23 = sshll.u32 %s394_s20, 2  ;;  %s1255_s24 = sshll.u32 %s1850_s13, 2 }
  0x3a   : > { %s402_s28 = scalar_lea.hbm %s2257_s0, %s1255_s24  ;;  %s398_s16 = scalar_lea.vmem [#allocation4], %s1254_s23 }
  0x3b   : > { %s406_s26 = sshll.u32 %s398_s16, 4  ;;  %s404_s25 = sshll.u32 %s402_s28, 4  ;;  %s407_s26 = int_to_ptr.vmem [resolvable:$true] %s406_s26  ;;  %s405_s25 = int_to_ptr.hbm [resolvable:$true] %s404_s25 }
  0x3c   : > { %p1371_p8 = pnand %p1388_p5, %p2021_p11  ;;  %s422_s5 = scalar_lea.hbm %s2258_s1, %s1255_s24 }
  0x3d   : > { %s413_s6 = sand.u32 1, %s1854_s14   ;;  %s395_s7 = scalar_lea.sflag [#allocation5], %s394_s20 }
  0x3e   : > { %1373 = dma.hbm_to_vmem [thread:$0]  (!%p1371_p8), %s405_s25, 64, %s407_s26, %s395_s7  }
  0x3f   : > { %s424_s8 = sshll.u32 %s422_s5, 4  ;;  %s417_s27 = scalar_lea.vmem [#allocation7], %s1254_s23  ;;  %s425_s8 = int_to_ptr.hbm [resolvable:$true] %s424_s8 }
  0x40   : > { %s426_s13 = sshll.u32 %s417_s27, 4  ;;  %s414_s18 = scalar_lea.sflag [#allocation8], %s413_s6  ;;  %s427_s13 = int_to_ptr.vmem [resolvable:$true] %s426_s13 }
  0x41   : > { %1376 = dma.hbm_to_vmem [thread:$0]  (!%p1371_p8), %s425_s8, 64, %s427_s13, %s414_s18  }
  0x42   : > { %435 = sbr.rel (%p1966_p3) target bundleno = 1738 (0x6ca), region = 56  ;;  %s2060_s2 = sand.u32 (!%p1966_p3), 1, %s1838_s10  }
  0x43   : > { %s1259_s4 = sshll.u32 (!%p1966_p3), %s2060_s2, 2  ;;  %s438_s24 = scalar_lea.sflag (!%p1966_p3), [#allocation5], %s2060_s2 }
  0x44   : > { %s441_s20 = scalar_lea.vmem (!%p1966_p3), [#allocation4], %s1259_s4 }
  0x47   : > { %1805 = dma.done.wait (%p2027_p12), %s438_s24, 64  }
  0x48   : > { %1807 = vsyncadd (%p2027_p12), %s438_s24, 4294967232  ;;  %s447_s5 = sand.u32 1, %s1958_s15   ;;  %s451_s7 = scalar_lea.vmem [#allocation7], %s1259_s4 }
  0x49   : > { %s448_s6 = scalar_lea.sflag [#allocation8], %s447_s5 }
  0x4a   : > { %1809 = dma.done.wait (%p2027_p12), %s448_s6, 64  }
  0x4b   : > { %1811 = vsyncadd (%p2027_p12), %s448_s6, 4294967232 }
  0x4c   : > { %1813 = dma.done.wait (%p64_p1), [#allocation8], 256  }
  0x4d   : > { %1815 = vsyncadd (%p64_p1), [#allocation8], 4294967040 }
  0x4e   : > { %1817 = dma.done.wait (%p64_p1), [#allocation11], 512  }
  0x4f   : > { %1819 = vsyncadd (%p64_p1), [#allocation11], 4294966784 }
  0x50   : > { %1821 = dma.done.wait (%p64_p1), [#allocation14], 256  }
  0x51   : > { %1823 = vsyncadd (%p64_p1), [#allocation14], 4294967040 }
  0x52   : > { %1825 = dma.done.wait (%p64_p1), [#allocation17], 256  }
  0x53   : > { %1827 = vsyncadd (%p64_p1), [#allocation17], 4294967040  ;;  %v1309_v0 = vld [vmem:[#allocation10 + $0x8] sm:$0xff]  ;;  %v1311_v1 = vld [vmem:[#allocation9 + $0x8] sm:$0xff]  ;;  %vm549_vm0 = vcmask 261120   ;;  %s1865_s8 = smov 100  }
  0x54   : > { %559 = vmatpush.bf16.msra.mxu0 %v1309_v0  ;;  %v1308_v2 = vld [vmem:[#allocation10] sm:$0xff]  ;;  %676 = vmatpush.bf16.msra.mxu1 %v1311_v1  ;;  %v1310_v3 = vld [vmem:[#allocation9] sm:$0xff]  ;;  %v649_v5 = vld [vmem:[%s451_s7] sm:$0xf]  ;;  %s1866_s13 = smov 108   ;;  %s1867_s15 = smov 116  }
  0x55   : > { %v532_v4 = vld [vmem:[%s441_s20] sm:$0xf]  ;;  %s1868_s19 = smov 124   ;;  %s1869_s27 = smov 8   ;;  %vm577_vm1 = vcmask 31744   ;;  %v567_v17 = vld [vmem:[#allocation15] sm:$0xff] }
  0x56   : > { %v566_v9 = vld [vmem:[#allocation13] sm:$0xff]  ;;  %s1870_s22 = smov 4   ;;  %s1871_s23 = smov 16   ;;  %v683_v33 = vld [vmem:[#allocation16] sm:$0xff]  ;;  %vm634_vm2 = vcmask 64512   ;;  %vm636_vm3 = vcmask 130048  }
  0x57   : > { %s1872_s21 = smov 24   ;;  %s1873_s28 = smov 96   ;;  %vm638_vm4 = vcmask 195584   ;;  %vm641_vm5 = vcmask 257024   ;;  %v684_v54 = vld [vmem:[#allocation18] sm:$0xff]  ;;  %vm747_vm6 = vcmask 1043456  }
  0x58   : > { %560 = vmatpush.bf16.msra.mxu0 %v1308_v2  ;;  %677 = vmatpush.bf16.msra.mxu1 %v1310_v3  ;;  %s1874_s16 = smov 120   ;;  %s1875_s26 = smov 104  }
  0x59   : > { %s1876_s25 = smov 112   ;;  %s1305_s17 = sshll.u32 %s1846_s12, 3 }
  0x5a   : > { %s1268_s18 = sshll.u32 %s2060_s2, 3  ;;  %s2293_s20 = sld [smem:[#allocation36_spill]] }
  0x5b   : > { %1277 = vmatmul.msk.bf16.vlgmr.msra.gmra.mxu0 %vm549_vm0, %v532_v4  ;;  %1286 = vmatmul.msk.bf16.vlgmr.msra.gmra.mxu1 %vm549_vm0, %v649_v5  ;;  %s526_s6 = scalar_lea.vmem [#allocation19], %s1268_s18 }
  0x5c   : > { %s1067_s7 = sshll.u32 %s526_s6, 4  ;;  %s1068_s7 = int_to_ptr.vmem [resolvable:$true] %s1067_s7 }
  0x60   : > { %s1065_s5 = scalar_lea.hbm %s2293_s20, %s1305_s17 }
  0xd8   : > { %v2091_v6 = vpop.f32.mrf.mxu0  ;;  %v2107_v10 = vpop.f32.mrf.mxu1 }
  0xd9   : > { %v568_v7 = vsub.f32 0.0, %v2091_v6  ;;  %v695_v11 = vsub.f32 0.0, %v2107_v10  ;;  %v579_v30 = vmul.f32 %v566_v9, %v2091_v6  ;;  %v643_v34 = vpack.c.bf16 %v2091_v6, %v2091_v6 }
  0xda   : > { %v706_v62 = vmul.f32 %v683_v33, %v2107_v10 }
  0xdb   : > { %617 = vrot.lane.b32.xlu2 %v568_v7, %s1865_s8  ;;  %600 = vrot.lane.b32.xlu1 %v568_v7, %s1866_s13 }
  0xdc   : > { %582 = vrot.lane.b32.xlu0 %v568_v7, %s1867_s15 }
  0xe0   : > { %v564_v8 = vpop.f32.mrf.mxu0  ;;  %v681_v12 = vpop.f32.mrf.mxu1 }
  0xe3   : > { %620 = vrot.lane.b32.xlu2 %v2091_v6, %s1866_s13  ;;  %603 = vrot.lane.b32.xlu1 %v2091_v6, %s1867_s15 }
  0xe4   : > { %585 = vrot.lane.b32.xlu0 %v2091_v6, %s1868_s19 }
  0xeb   : > { %590 = vrot.lane.b32.xlu2 %v566_v9, %s1869_s27  ;;  %574 = vrot.lane.b32.xlu1 %v2091_v6, %s1870_s22 }
  0xec   : > { %607 = vrot.lane.b32.xlu0 %v566_v9, %s1871_s23 }
  0xf3   : > { %624 = vrot.lane.b32.xlu2 %v566_v9, %s1872_s21 }
  0xf4   : > { %570 = vrot.lane.b32.xlu0 %v568_v7, %s1868_s19 }
  0xfb   : > { %697 = vrot.lane.b32.xlu2 %v695_v11, %s1868_s19 }
 0x103   : > { %767 = vrot.lane.b32.xlu2 %v2107_v10, %s1868_s19 }
 0x10b   : > { %851 = vrot.lane.b32.xlu2 %v2107_v10, %s1867_s15 }
 0x113   : > { %928 = vrot.lane.b32.xlu2 %v2107_v10, %s1866_s13 }
 0x135   : > { %v618_v15 = vpop.permute.xlu2 %617 }
 0x13d   : > { %v621_v23 = vpop.permute.xlu2 %620 }
 0x13e   : > { %v623_v24 = vsel %vm577_vm1, %v618_v15, %v621_v23  ;;  %v686_v23 = vlaneseq }
 0x13f   : > { %v628_v26 = vmul.f32 %v623_v24, %v567_v17 }
 0x140   : > { %v2159_v24 = vshrl.u32 %v686_v23, 7 }
 0x145   : > { %v591_v35 = vpop.permute.xlu2 %590 }
 0x146   : > { %v593_v38 = vmul.f32 %v591_v35, %v2091_v6 }
 0x14d   : > { %v601_v13 = vpop.permute.xlu1 %600  ;;  %v625_v36 = vpop.permute.xlu2 %624 }
 0x14e   : > { %v583_v14 = vpop.permute.xlu0 %582  ;;  %v627_v44 = vmul.f32 %v625_v36, %v2091_v6 }
 0x155   : > { %v604_v16 = vpop.permute.xlu1 %603  ;;  %v698_v39 = vpop.permute.xlu2 %697 }
 0x156   : > { %v606_v18 = vsel %vm577_vm1, %v601_v13, %v604_v16  ;;  %v586_v19 = vpop.permute.xlu0 %585 }
 0x157   : > { %v611_v20 = vmul.f32 %v606_v18, %v567_v17  ;;  %v588_v21 = vsel %vm577_vm1, %v583_v14, %v586_v19 }
 0x158   : > { %v594_v22 = vmul.f32 %v588_v21, %v567_v17 }
 0x159   : > { %613 = vrot.lane.b32.xlu0 %v611_v20, %s1871_s23 }
 0x15a   : > { %596 = vrot.lane.b32.xlu1 %v594_v22, %s1869_s27 }
 0x15d   : > { %v575_v27 = vpop.permute.xlu1 %574  ;;  %v768_v50 = vpop.permute.xlu2 %767 }
 0x15e   : > { %v608_v25 = vpop.permute.xlu0 %607 }
 0x15f   : > { %v610_v42 = vmul.f32 %v608_v25, %v2091_v6  ;;  %v2161_v25 = vand.u32 127, %v686_v23 }
 0x161   : > { %701 = vrot.lane.b32.xlu0 %v2107_v10, %s1870_s22  ;;  %vm692_vm7 = vcmp.le.s32.totalorder %v2161_v25, %v2159_v24  ;;  %s1772_s22 = scalar_lea.hbm %s2293_s20, 16 }
 0x162   : > { %630 = vrot.lane.b32.xlu1 %v628_v26, %s1872_s21 }
 0x165   : > { %v852_v60 = vpop.permute.xlu2 %851 }
 0x166   : > { %v571_v28 = vpop.permute.xlu0 %570 }
 0x167   : > { %v578_v29 = vsel %vm577_vm1, %v571_v28, %v575_v27 }
 0x168   : > { %v580_v31 = vmul.f32 %v578_v29, %v567_v17 }
 0x16a   : > { %v581_v32 = vadd.f32 %v580_v31, %v579_v30  ;;  %764 = vrot.lane.b32.xlu1 %v695_v11, %s1867_s15 }
 0x16d   : > { %v929_v5 = vpop.permute.xlu2 %928 }
 0x172   : > { %848 = vrot.lane.b32.xlu1 %v695_v11, %s1866_s13  ;;  %s1054_s13 = scalar_lea.sflag [#allocation6], %s2060_s2 }
 0x17a   : > { %925 = vrot.lane.b32.xlu1 %v695_v11, %s1865_s8  ;;  %s1069_s8 = sshll.u32 %s1065_s5, 4  ;;  %s1070_s8 = int_to_ptr.hbm [resolvable:$true] %s1069_s8 }
 0x17b   : > { %s1766_s15 = sshra.s32 %s1070_s8, 4  ;;  %s1767_s15 = int_to_ptr.hbm [resolvable:$true] %s1766_s15 }
 0x17c   : > { %s1768_s19 = scalar_lea.hbm %s1767_s15, 8  ;;  %p1773_p10 = scmp.lt.s32.totalorder %s1767_s15, %s2293_s20 }
 0x17d   : > { %p1769_p1 = scmp.ne.s32.totalorder %s1767_s15, %s1768_s19  ;;  %p1774_p11 = scmp.lt.s32.totalorder %s1772_s22, %s1768_s19 }
 0x17f   : > { %p1770_p3 = pnand %p1769_p1, %p2034_p4  ;;  %p1775_p12 = por %p1774_p11, %p1773_p10 }
 0x181   : > { %p1771_p9 = pneg %p1770_p3 }
 0x182   : > { %772 = vrot.lane.b32.xlu1 %v683_v33, %s1869_s27 }
 0x183   : > { %p1776_p13 = pnand %p1775_p12, %p1771_p9 }
 0x18a   : > { %855 = vrot.lane.b32.xlu1 %v683_v33, %s1871_s23 }
 0x192   : > { %645 = vrot.lane.b32.xlu1 %v643_v34, %s1873_s28 }
 0x1cb   : > { %v614_v41 = vpop.permute.xlu0 %613 }
 0x1cc   : > { %v597_v37 = vpop.permute.xlu1 %596  ;;  %v616_v43 = vadd.f32 %v614_v41, %v610_v42 }
 0x1cd   : > { %v599_v40 = vadd.f32 %v597_v37, %v593_v38 }
 0x1cf   : > { %v635_v45 = vsel %vm634_vm2, %v581_v32, %v599_v40 }
 0x1d0   : > { %v637_v48 = vsel %vm636_vm3, %v635_v45, %v616_v43 }
 0x1d3   : > { %v702_v52 = vpop.permute.xlu0 %701 }
 0x1d4   : > { %v631_v46 = vpop.permute.xlu1 %630  ;;  %v705_v55 = vsel %vm577_vm1, %v698_v39, %v702_v52 }
 0x1d5   : > { %v633_v47 = vadd.f32 %v631_v46, %v627_v44  ;;  %v707_v58 = vmul.f32 %v705_v55, %v684_v54 }
 0x1d7   : > { %v639_v49 = vsel %vm638_vm4, %v637_v48, %v633_v47  ;;  %v708_v0 = vadd.f32 %v707_v58, %v706_v62 }
 0x1d8   : > { %v640_v51 = vpack.c.bf16 %v639_v49, %v639_v49 }
 0x1d9   : > { %v709_v3 = vpack.c.bf16 %v708_v0, %v708_v0 }
 0x1da   : > { %642 = vst.msk [vmem:[#allocation2] sm:$0xf] %vm641_vm5, %v640_v51 }
 0x1dc   : > { %v765_v53 = vpop.permute.xlu1 %764 }
 0x1dd   : > { %v770_v56 = vsel %vm577_vm1, %v765_v53, %v768_v50 }
 0x1de   : > { %v776_v57 = vmul.f32 %v770_v56, %v684_v54 }
 0x1e0   : > { %778 = vrot.lane.b32.xlu2 %v776_v57, %s1869_s27 }
 0x1e1   : > { %v693_v59 = vld [vmem:[#allocation2] sm:$0xf] }
 0x1e2   : > { %v715_v61 = vsel %vm634_vm2, %v693_v59, 0  ;;  %v787_v4 = vunpack.c.l.b16 %v693_v59 }
 0x1e3   : > { %724 = vmatpush.bf16.xpose.msra.mxu2 %v715_v61 }
 0x1e4   : > { %v849_v63 = vpop.permute.xlu1 %848  ;;  %v788_v8 = vpack.c.b16 %v787_v4, %v787_v4 }
 0x1e5   : > { %v854_v1 = vsel %vm577_vm1, %v849_v63, %v852_v60 }
 0x1e6   : > { %v859_v2 = vmul.f32 %v854_v1, %v684_v54 }
 0x1e8   : > { %932 = vrot.lane.b32.xlu2 %v683_v33, %s1872_s21  ;;  %861 = vrot.lane.b32.xlu1 %v859_v2, %s1871_s23 }
 0x1ea   : > { %1287 = vmatmul.msk.bf16.vlgmr.msra.gmra.mxu2 %vm634_vm2, %v709_v3 }
 0x1ec   : > { %v926_v6 = vpop.permute.xlu1 %925 }
 0x1ed   : > { %v931_v7 = vsel %vm577_vm1, %v926_v6, %v929_v5 }
 0x1ee   : > { %v936_v9 = vmul.f32 %v931_v7, %v684_v54 }
 0x1f0   : > { %789 = vrot.lane.b32.xlu1 %v788_v8, %s1874_s16 }
 0x1f4   : > { %v773_v11 = vpop.permute.xlu1 %772 }
 0x1f5   : > { %v775_v16 = vmul.f32 %v773_v11, %v2107_v10 }
 0x1fc   : > { %v856_v12 = vpop.permute.xlu1 %855 }
 0x1fd   : > { %v858_v31 = vmul.f32 %v856_v12, %v2107_v10 }
 0x204   : > { %v646_v13 = vpop.permute.xlu1 %645 }
 0x205   : > { %648 = vst.msk [vmem:[#allocation3] sm:$0xf] %vm641_vm5, %v646_v13 }
 0x20c   : > { %v2151_v14 = vld [vmem:[#allocation3] sm:$0xf] }
 0x20d   : > { %v749_v15 = vsel %vm747_vm6, %v2151_v14, 0  ;;  %v825_v7 = vunpack.c.l.b16 %v2151_v14 }
 0x20e   : > { %758 = vmatpush.bf16.msra.mxu3 %v749_v15 }
 0x23a   : > { %v779_v17 = vpop.permute.xlu2 %778 }
 0x23b   : > { %v781_v18 = vadd.f32 %v779_v17, %v775_v16 }
 0x23d   : > { %v782_v19 = vpack.c.bf16 %v781_v18, %v781_v18 }
 0x23f   : > { %784 = vrot.lane.b32.xlu1 %v782_v19, %s1874_s16 }
 0x242   : > { %v933_v39 = vpop.permute.xlu2 %932 }
 0x243   : > { %v935_v40 = vmul.f32 %v933_v39, %v2107_v10 }
 0x247   : > { %946 = vrot.lane.b32.xlu1 %v788_v8, %s1875_s26 }
 0x25a   : > { %v862_v20 = vpop.permute.xlu1 %861 }
 0x25b   : > { %v864_v32 = vadd.f32 %v862_v20, %v858_v31 }
 0x25d   : > { %v865_v33 = vpack.c.bf16 %v864_v32, %v864_v32 }
 0x262   : > { %v790_v21 = vpop.permute.xlu1 %789 }
 0x263   : > { %v795_v22 = vsel %vm634_vm2, %v790_v21, 0 }
 0x264   : > { %804 = vmatpush.bf16.xpose.msrb.mxu3 %v795_v22 }
 0x26d   : > { %v726_v26 = vpop.f32.mrf.mxu2 }
 0x26e   : > { %v730_v27 = vmul.f32 0.17677669, %v726_v26 }
 0x270   : > { %v731_v28 = vsel %vm692_vm7, %v730_v27, -inf }
 0x271   : > { %v732_v29 = vsel %vm634_vm2, %v731_v28, -inf }
 0x272   : > { %733 = vmax.xlane.f32.xlu0 %v732_v29 }
 0x275   : > { %v728_v30 = vpop.f32.mrf.mxu2 }
 0x286   : > { %938 = vrot.lane.b32.xlu0 %v936_v9, %s1872_s21 }
 0x28e   : > { %869 = vrot.lane.b32.xlu0 %v788_v8, %s1876_s25  ;;  %v826_v8 = vpack.c.b16 %v825_v7, %v825_v7 }
 0x296   : > { %867 = vrot.lane.b32.xlu0 %v865_v33, %s1876_s25 }
 0x2b1   : > { %v785_v47 = vpop.permute.xlu1 %784 }
 0x2b9   : > { %v947_v51 = vpop.permute.xlu1 %946 }
 0x2ba   : > { %v952_v10 = vsel %vm634_vm2, %v947_v51, 0 }
 0x2e5   : > { %v734_v34 = vpop.xlane.xlu0 %733 }
 0x2e6   : > { %v735_v35 = vsub.f32 %v731_v28, %v734_v34 }
 0x2e8   : > { %v736_v36 = vmul.f32 1.442695, %v735_v35 }
 0x2ea   : > { %1466 = vpow2.f32 %v736_v36 }
 0x2f0   : > { %v1467_v37 = vpop.eup %1466 }
 0x2f1   : > { %v738_v38 = vsel %vm634_vm2, %v1467_v37, 0.0 }
 0x2f2   : > { %739 = vadd.xlane.f32.xlu2 %v738_v38 }
 0x2f8   : > { %v939_v41 = vpop.permute.xlu0 %938 }
 0x2f9   : > { %v941_v42 = vadd.f32 %v939_v41, %v935_v40 }
 0x2fb   : > { %v942_v43 = vpack.c.bf16 %v941_v42, %v941_v42 }
 0x2fd   : > { %944 = vrot.lane.b32.xlu1 %v942_v43, %s1875_s26 }
 0x300   : > { %v870_v44 = vpop.permute.xlu0 %869 }
 0x301   : > { %v875_v45 = vsel %vm634_vm2, %v870_v44, 0 }
 0x302   : > { %884 = vmatpush.bf16.xpose.msrb.mxu1 %v875_v45 }
 0x308   : > { %v868_v46 = vpop.permute.xlu0 %867 }
 0x309   : > { %1291 = vmatmul.msk.bf16.vlgmr.msrb.gmra.mxu1 %vm634_vm2, %v868_v46 }
 0x365   : > { %v740_v48 = vpop.xlane.xlu2 %739 }
 0x366   : > { %1468 = vrcp.f32 %v740_v48 }
 0x36c   : > { %v1469_v49 = vpop.eup %1468 }
 0x36d   : > { %v742_v50 = vmul.f32 %v1469_v49, %v1467_v37  ;;  %v1313_v49 = vld [vmem:[#allocation12 + $0x8] sm:$0xff] }
 0x36e   : > { %1045 = vmatpush.bf16.msra.mxu1 %v1313_v49 }
 0x36f   : > { %v743_v52 = vpack.c.bf16 %v742_v50, %v742_v50  ;;  %v945_v58 = vpop.permute.xlu1 %944  ;;  %v1312_v50 = vld [vmem:[#allocation12] sm:$0xff] }
 0x371   : > { %1288 = vmatmul.msk.bf16.vlgmr.msra.gmra.mxu3 %vm634_vm2, %v743_v52 }
 0x372   : > { %961 = vmatpush.bf16.xpose.msra.mxu3 %v952_v10  ;;  %1046 = vmatpush.bf16.msra.mxu1 %v1312_v50 }
 0x381   : > { %1289 = vmatmul.msk.bf16.vlgmr.msrb.gmra.mxu3 %vm634_vm2, %v785_v47 }
 0x386   : > { %v886_v53 = vpop.f32.mrf.mxu1 }
 0x387   : > { %v890_v54 = vmul.f32 0.17677669, %v886_v53 }
 0x389   : > { %v891_v55 = vsel %vm692_vm7, %v890_v54, -inf }
 0x38a   : > { %v892_v56 = vsel %vm634_vm2, %v891_v55, -inf }
 0x38b   : > { %893 = vmax.xlane.f32.xlu0 %v892_v56 }
 0x38e   : > { %v888_v57 = vpop.f32.mrf.mxu1 }
 0x391   : > { %1293 = vmatmul.msk.bf16.vlgmr.msra.gmra.mxu3 %vm634_vm2, %v945_v58 }
 0x3f4   : > { %v2186_v59 = vpop.f32.mrf.mxu3 }
 0x3fc   : > { %v762_v60 = vpop.f32.mrf.mxu3 }
 0x3fe   : > { %v894_v22 = vpop.xlane.xlu0 %893 }
 0x3ff   : > { %v895_v23 = vsub.f32 %v891_v55, %v894_v22 }
 0x401   : > { %v896_v24 = vmul.f32 1.442695, %v895_v23 }
 0x404   : > { %v806_v61 = vpop.f32.mrf.mxu3 }
 0x405   : > { %v810_v62 = vmul.f32 0.17677669, %v806_v61 }
 0x407   : > { %v811_v63 = vsel %vm692_vm7, %v810_v62, -inf }
 0x408   : > { %v812_v0 = vsel %vm634_vm2, %v811_v63, -inf }
 0x409   : > { %813 = vmax.xlane.f32.xlu2 %v812_v0 }
 0x40c   : > { %v808_v1 = vpop.f32.mrf.mxu3 }
 0x414   : > { %v963_v2 = vpop.f32.mrf.mxu3 }
 0x415   : > { %v967_v3 = vmul.f32 0.17677669, %v963_v2 }
 0x417   : > { %v968_v4 = vsel %vm692_vm7, %v967_v3, -inf }
 0x418   : > { %v969_v5 = vsel %vm634_vm2, %v968_v4, -inf }
 0x419   : > { %970 = vmax.xlane.f32.xlu1 %v969_v5 }
 0x41c   : > { %v965_v6 = vpop.f32.mrf.mxu3 }
 0x432   : > { %904 = vrot.lane.b32.xlu1 %v826_v8, %s1876_s25 }
 0x47c   : > { %v814_v9 = vpop.xlane.xlu2 %813 }
 0x47d   : > { %v815_v11 = vsub.f32 %v811_v63, %v814_v9 }
 0x47f   : > { %v816_v12 = vmul.f32 1.442695, %v815_v11 }
 0x481   : > { %1470 = vpow2.f32 %v816_v12 }
 0x487   : > { %v1471_v13 = vpop.eup %1470 }
 0x488   : > { %v818_v15 = vsel %vm634_vm2, %v1471_v13, 0.0 }
 0x489   : > { %819 = vadd.xlane.f32.xlu2 %v818_v15 }
 0x48c   : > { %v971_v16 = vpop.xlane.xlu1 %970 }
 0x48d   : > { %v972_v17 = vsub.f32 %v968_v4, %v971_v16 }
 0x48f   : > { %v973_v18 = vmul.f32 1.442695, %v972_v17 }
 0x491   : > { %1472 = vpow2.f32 %v973_v18 }
 0x492   : > { %1474 = vpow2.f32 %v896_v24 }
 0x497   : > { %v1473_v19 = vpop.eup %1472 }
 0x498   : > { %v975_v20 = vsel %vm634_vm2, %v1473_v19, 0.0  ;;  %v1475_v25 = vpop.eup %1474 }
 0x499   : > { %976 = vadd.xlane.f32.xlu0 %v975_v20  ;;  %v898_v26 = vsel %vm634_vm2, %v1475_v25, 0.0 }
 0x4a1   : > { %827 = vrot.lane.b32.xlu2 %v826_v8, %s1874_s16 }
 0x4a4   : > { %v905_v14 = vpop.permute.xlu1 %904 }
 0x4a5   : > { %v910_v21 = vsel %vm747_vm6, %v905_v14, 0 }
 0x4a6   : > { %919 = vmatpush.bf16.msrb.mxu2 %v910_v21 }
 0x4ad   : > { %981 = vrot.lane.b32.xlu0 %v826_v8, %s1875_s26 }
 0x4ca   : > { %899 = vadd.xlane.f32.xlu2 %v898_v26 }
 0x4fc   : > { %v820_v27 = vpop.xlane.xlu2 %819 }
 0x4fd   : > { %1476 = vrcp.f32 %v820_v27 }
 0x503   : > { %v1477_v28 = vpop.eup %1476 }
 0x504   : > { %v822_v29 = vmul.f32 %v1477_v28, %v1471_v13  ;;  %v828_v30 = vpop.permute.xlu2 %827 }
 0x505   : > { %v833_v31 = vsel %vm747_vm6, %v828_v30, 0 }
 0x506   : > { %842 = vmatpush.bf16.msrb.mxu0 %v833_v31  ;;  %v823_v32 = vpack.c.bf16 %v822_v29, %v822_v29 }
 0x509   : > { %1290 = vmatmul.msk.bf16.vlgmr.msrb.gmra.mxu0 %vm634_vm2, %v823_v32 }
 0x50c   : > { %v977_v33 = vpop.xlane.xlu0 %976 }
 0x50d   : > { %1478 = vrcp.f32 %v977_v33 }
 0x513   : > { %v1479_v34 = vpop.eup %1478 }
 0x514   : > { %v979_v35 = vmul.f32 %v1479_v34, %v1473_v19 }
 0x516   : > { %v980_v38 = vpack.c.bf16 %v979_v35, %v979_v35 }
 0x51f   : > { %v982_v36 = vpop.permute.xlu0 %981 }
 0x520   : > { %v987_v37 = vsel %vm747_vm6, %v982_v36, 0 }
 0x521   : > { %996 = vmatpush.bf16.msra.mxu0 %v987_v37 }
 0x524   : > { %1294 = vmatmul.msk.bf16.vlgmr.msra.gmra.mxu0 %vm634_vm2, %v980_v38 }
 0x53d   : > { %v900_v39 = vpop.xlane.xlu2 %899 }
 0x53e   : > { %1480 = vrcp.f32 %v900_v39 }
 0x544   : > { %v1481_v40 = vpop.eup %1480 }
 0x545   : > { %v902_v41 = vmul.f32 %v1481_v40, %v1475_v25 }
 0x547   : > { %v903_v42 = vpack.c.bf16 %v902_v41, %v902_v41 }
 0x549   : > { %1292 = vmatmul.msk.bf16.vlgmr.msrb.gmra.mxu2 %vm634_vm2, %v903_v42 }
 0x586   : > { %v844_v43 = vpop.f32.mrf.mxu0 }
 0x587   : > { %1003 = vrot.lane.b32.xlu1 %v844_v43, %s1869_s27 }
 0x58e   : > { %v846_v44 = vpop.f32.mrf.mxu0 }
 0x5a1   : > { %v998_v45 = vpop.f32.mrf.mxu0 }
 0x5a2   : > { %1011 = vrot.lane.b32.xlu2 %v998_v45, %s1872_s21 }
 0x5a9   : > { %v1000_v46 = vpop.f32.mrf.mxu0 }
 0x5cc   : > { %v921_v47 = vpop.f32.mrf.mxu2 }
 0x5cd   : > { %1007 = vrot.lane.b32.xlu0 %v921_v47, %s1871_s23 }
 0x5d4   : > { %v923_v48 = vpop.f32.mrf.mxu2 }
 0x5f9   : > { %v1004_v51 = vpop.permute.xlu1 %1003 }
 0x5fa   : > { %v1014_v52 = vsel %vm634_vm2, %v2186_v59, %v1004_v51 }
 0x5fc   : > { %v1012_v53 = vpop.permute.xlu2 %1011 }
 0x63f   : > { %v1008_v10 = vpop.permute.xlu0 %1007 }
 0x640   : > { %v1016_v54 = vsel %vm636_vm3, %v1014_v52, %v1008_v10 }
 0x641   : > { %v1018_v55 = vsel %vm638_vm4, %v1016_v54, %v1012_v53 }
 0x642   : > { %v1019_v56 = vpack.c.bf16 %v1018_v55, %v1018_v55 }
 0x644   : > { %1303 = vmatmul.msk.bf16.vlgmr.msra.gmra.mxu1 %vm549_vm0, %v1019_v56 }
 0x6c1   : > { %v1048_v57 = vpop.f32.mrf.mxu1 }
 0x6c2   : > { %1052 = vst.msk [vmem:[%s526_s6] sm:$0xff] %vm549_vm0, %v1048_v57 }
 0x6c3   : > { %1779 = shalt.err (!%p1776_p13)
}
 0x6c4   : > { %1346 = dma.vmem_to_hbm [thread:$0]  (%p2034_p4), %s1068_s7, 128, %s1070_s8, %s1054_s13  }
 0x6c9   : > { %v1050_v58 = vpop.f32.mrf.mxu1 }
 0x6ca PF: > { %s1081_s2 = sand.u32 1, %s1834_s30   ;;  %p1378_p0 = pnand %p1253_p6, %p2042_p7 }
 0x6cb   : > { %s1082_s28 = scalar_lea.sflag [#allocation6], %s1081_s2 }
 0x6cc   : > { %p1379_p2 = pneg %p1378_p0 }
 0x6ce   : > { %1829 = dma.done.wait (%p1379_p2), %s1082_s28, 128  }
 0x6cf   : > { %1831 = vsyncadd (%p1379_p2), %s1082_s28, 4294967168  ;;  %s31_s14 = sadd.s32 1, %s1854_s14   ;;  %s2294_s12 = sld [smem:[#allocation27_spill]] }
 0x6d0   : > { %p28_p5 = scmp.ge.s32.totalorder %s31_s14, 4   ;;  %s2295_s13 = sld [smem:[#allocation28_spill]] }
 0x6d1   : > { %s2296_s30 = smov %s1838_s10  ;;  %s2297_s10 = smov %s1842_s11 }
 0x6d2   : > { %s2298_s11 = smov %s2040_s29  ;;  %30 = sbr.rel (!%p28_p5) target bundleno = 20 (0x14), region = 148 }
 0x6d7   :  { %1088 = vsyncpa [#allocation5], 1 }
 0x6d8   :  { %1090 = vsyncpa [#allocation5 + $0x1], 1 }
 0x6d9   :  { %1091 = vsyncpa [#allocation8], 1 }
 0x6da   :  { %1093 = vsyncpa [#allocation8 + $0x1], 1 }
 0x6db   :  { %1094 = vsyncpa [#allocation11], 1 }
 0x6dc   :  { %1095 = vsyncpa [#allocation14], 1 }
 0x6dd   :  { %1096 = vsyncpa [#allocation17], 1 }
 0x6de   :  { %1097 = vsyncpa [#allocation6], 1 }
 0x6df   :  { %1099 = vsyncpa [#allocation6 + $0x1], 1 }

</bundles_post_ra>
